<compile_context>
chip_gen: v7x
topology: tpu7x:2x2x1
jax: 0.10.0
libtpu: 0.0.40
codegen_flags: <defaults>
</compile_context>

<pallas_src>
import functools

import jax
import jax.numpy as jnp
from jax.experimental import pallas as pl
from jax.experimental.pallas import tpu as pltpu


def _round_up(v, m):
    return (v + m - 1) // m * m


def _probe_buffered():
    # Narrow, construction-only probe for pipeline_mode=pl.Buffered support.
    try:
        pl.BlockSpec((8, 128), lambda i: (0, 0), pipeline_mode=pl.Buffered(1))
        return True
    except (TypeError, AttributeError):
        return False


_HAS_BUFFERED = _probe_buffered()


def _feature_projection_kernel(x_ref, w_ref, b_ref, g_ref, beta_ref,
                               proj_ref, norm_ref, *, eps):
    # ---- LayerNorm in f32 (biased variance, eps inside rsqrt: matches nn.LayerNorm) ----
    x = x_ref[...].astype(jnp.float32)                        # (tm, d_in)
    mean = jnp.mean(x, axis=-1, keepdims=True)
    centered = x - mean
    var = jnp.mean(centered * centered, axis=-1, keepdims=True)
    xn = centered * jax.lax.rsqrt(var + eps)
    norm = xn * g_ref[...] + beta_ref[...]                    # (tm, d_in), f32
    norm_ref[...] = norm.astype(norm_ref.dtype)

    # ---- Linear projection: bf16 operands into the MXU, f32 accumulation ----
    proj = jnp.dot(norm.astype(jnp.bfloat16), w_ref[...],
                   preferred_element_type=jnp.float32)        # (tm, d_hidden)
    proj = proj + b_ref[...]
    # Dropout (feat_proj_dropout) is the identity in eval mode.
    proj_ref[...] = proj.astype(proj_ref.dtype)


def _build_call(T, tm, d_in, d_hidden, x_dtype, out_dtype, eps):
    kernel = functools.partial(_feature_projection_kernel, eps=eps)
    grid = (pl.cdiv(T, tm),)                                  # partial last block OK

    rows = lambda i: (i, 0)
    full = lambda i: (0, 0)
    # Grid-invariant operands: single-buffer them when supported (default
    # double-buffering would allocate 2x each weight in VMEM).
    inv = dict(pipeline_mode=pl.Buffered(1)) if _HAS_BUFFERED else {}

    in_specs = [
        pl.BlockSpec((tm, d_in), rows),                       # x rows (streamed)
        pl.BlockSpec((d_in, d_hidden), full, **inv),          # W   (bf16, resident)
        pl.BlockSpec((1, d_hidden), full, **inv),             # b
        pl.BlockSpec((1, d_in), full, **inv),                 # ln gamma
        pl.BlockSpec((1, d_in), full, **inv),                 # ln beta
    ]
    out_specs = [
        pl.BlockSpec((tm, d_hidden), rows),                   # projected hidden states
        pl.BlockSpec((tm, d_in), rows),                       # norm hidden states
    ]

    # VMEM limit derived from the actual tile footprint (double-buffered streams,
    # single-buffered weights when Buffered(1) is in effect), capped at 64 MiB (v7x).
    x_bytes = tm * d_in * jnp.dtype(x_dtype).itemsize
    out_bytes = tm * (d_in + d_hidden) * jnp.dtype(out_dtype).itemsize
    w_bytes = d_in * d_hidden * 2                             # bf16 weights
    param_bytes = (d_hidden + 2 * d_in) * 4
    weight_bufs = 1 if _HAS_BUFFERED else 2
    needed = 2 * (x_bytes + out_bytes) + weight_bufs * (w_bytes + param_bytes)
    vmem_limit = min(64 * 1024 * 1024,
                     _round_up(int(needed * 1.25) + (2 << 20), 1 << 20))

    cost = pl.CostEstimate(
        flops=2 * T * d_in * d_hidden + 8 * T * d_in,
        transcendentals=T,                                    # one rsqrt per row
        bytes_accessed=(T * d_in * jnp.dtype(x_dtype).itemsize
                        + T * (d_in + d_hidden) * jnp.dtype(out_dtype).itemsize
                        + w_bytes + param_bytes),
    )

    return pl.pallas_call(
        kernel,
        out_shape=(
            jax.ShapeDtypeStruct((T, d_hidden), out_dtype),
            jax.ShapeDtypeStruct((T, d_in), out_dtype),
        ),
        grid_spec=pltpu.PrefetchScalarGridSpec(
            num_scalar_prefetch=0,
            grid=grid,
            in_specs=in_specs,
            out_specs=out_specs,
        ),
        compiler_params=pltpu.CompilerParams(
            dimension_semantics=("parallel",),                # row loop shards across TCs
            vmem_limit_bytes=vmem_limit,
        ),
        cost_estimate=cost,
    )


def prepare_feature_projection_params(weight, bias, ln_weight, ln_bias):
    """One-time weight prep, hoisted out of the per-call path.

    `weight` is (d_in, d_hidden), i.e. the PyTorch Linear weight already transposed
    from its (out, in) layout. bf16 weights halve the weight DMA/VMEM footprint;
    LayerNorm params and bias stay f32.
    """
    d_in, d_hidden = weight.shape
    return {
        "w": weight.astype(jnp.bfloat16),
        "b": bias.reshape(1, d_hidden).astype(jnp.float32),
        "gamma": ln_weight.reshape(1, d_in).astype(jnp.float32),
        "beta": ln_bias.reshape(1, d_in).astype(jnp.float32),
    }


def feature_projection(hidden_states, params, *, eps=1e-5, tm=512,
                       out_dtype=jnp.bfloat16):
    """TransformerTransducerFeatureProjection forward (eval mode).

    hidden_states: (..., d_in); params from prepare_feature_projection_params().
    Returns (projected_hidden_states, norm_hidden_states), both in `out_dtype`.
    """
    *lead, d_in = hidden_states.shape
    d_hidden = params["w"].shape[1]
    T = 1
    for d in lead:
        T *= d
    x2d = hidden_states.reshape(T, d_in)

    # Row tile: large (mem-bound knee ~512-1024), rounded to 32 sublanes, capped so
    # the 1-D grid keeps >= 2 steps (so v7x's 2 TCs both get work).
    half = max(pl.cdiv(T, 2), 32)
    tm_eff = _round_up(max(32, min(tm, half)), 32)

    call = _build_call(T, tm_eff, d_in, d_hidden, x2d.dtype, out_dtype, eps)
    proj2d, norm2d = call(x2d, params["w"], params["b"],
                          params["gamma"], params["beta"])

    proj = proj2d.reshape(*lead, d_hidden)
    norm = norm2d.reshape(*lead, d_in)
    return proj, norm


def _ref_forward(x, w, b, gamma, beta, *, eps=1e-5):
    """Pure-JAX f32 reference mirroring the PyTorch module (eval mode)."""
    mean = jnp.mean(x, axis=-1, keepdims=True)
    var = jnp.mean((x - mean) ** 2, axis=-1, keepdims=True)
    norm = (x - mean) / jnp.sqrt(var + eps) * gamma + beta
    proj = norm @ w + b
    return proj, norm


if __name__ == "__main__":
    # Small, lane-dense shapes: d_in / d_hidden multiples of 128; seq chosen so the
    # partial last row-block (T=60, tm_eff=32 -> 2 grid steps) is exercised.
    batch, seq = 2, 30
    d_in, d_hidden = 128, 256           # feature_projection_input_dim, hidden_size
    eps = 1e-5

    key = jax.random.PRNGKey(0)
    kx, kw, kb, kg, kbeta = jax.random.split(key, 5)

    x = jax.random.normal(kx, (batch, seq, d_in), dtype=jnp.float32)

    lim = 1.0 / (d_in ** 0.5)           # PyTorch Linear init bounds
    w = jax.random.uniform(kw, (d_in, d_hidden), jnp.float32, -lim, lim)
    b = jax.random.uniform(kb, (d_hidden,), jnp.float32, -lim, lim)
    gamma = 1.0 + 0.1 * jax.random.normal(kg, (d_in,), dtype=jnp.float32)
    beta = 0.1 * jax.random.normal(kbeta, (d_in,), dtype=jnp.float32)

    params = prepare_feature_projection_params(w, b, gamma, beta)

    proj, norm = feature_projection(x, params, eps=eps)
    proj = jax.block_until_ready(proj)
    norm = jax.block_until_ready(norm)

    ref_proj, ref_norm = _ref_forward(x, w, b, gamma, beta, eps=eps)

    assert proj.shape == (batch, seq, d_hidden)
    assert norm.shape == (batch, seq, d_in)
    assert proj.dtype == jnp.bfloat16 and norm.dtype == jnp.bfloat16

    # LayerNorm math is f32; outputs are bf16 -> tolerance covers bf16 rounding.
    assert jnp.allclose(norm.astype(jnp.float32), ref_norm,
                        atol=3e-2, rtol=3e-2), "norm mismatch"
    # Projection uses bf16 MXU operands (f32 accumulation) + bf16 output.
    assert jnp.allclose(proj.astype(jnp.float32), ref_proj,
                        atol=5e-2, rtol=5e-2), "projection mismatch"

    print("KERNEL_OK")
</pallas_src>

<mosaic_0001>
module attributes {stable_mosaic.version = 11 : i64} {
  func.func @_feature_projection_kernel(%arg0: i32, %arg1: memref<32x128xf32, #tpu.memory_space<vmem>>, %arg2: memref<128x256xbf16, #tpu.memory_space<vmem>>, %arg3: memref<1x256xf32, #tpu.memory_space<vmem>>, %arg4: memref<1x128xf32, #tpu.memory_space<vmem>>, %arg5: memref<1x128xf32, #tpu.memory_space<vmem>>, %arg6: memref<32x256xbf16, #tpu.memory_space<vmem>>, %arg7: memref<32x128xbf16, #tpu.memory_space<vmem>>) attributes {dimension_semantics = [#tpu.dimension_semantics<parallel>], iteration_bounds = array<i64: 2>, scalar_prefetch = 0 : i64, scratch_operands = 0 : i64, tpu.core_type = #tpu.core_type<tc>, window_params = [{transform_indices = @transform_0, window_bounds = array<i64: 32, 128>}, {pipeline_mode = #tpu.pipeline_mode<synchronous>, transform_indices = @transform_1, window_bounds = array<i64: 128, 256>}, {pipeline_mode = #tpu.pipeline_mode<synchronous>, transform_indices = @transform_2, window_bounds = array<i64: 1, 256>}, {pipeline_mode = #tpu.pipeline_mode<synchronous>, transform_indices = @transform_3, window_bounds = array<i64: 1, 128>}, {pipeline_mode = #tpu.pipeline_mode<synchronous>, transform_indices = @transform_4, window_bounds = array<i64: 1, 128>}, {transform_indices = @transform_5, window_bounds = array<i64: 32, 256>}, {transform_indices = @transform_6, window_bounds = array<i64: 32, 128>}]} {
    %c0 = arith.constant 0 : index
    %c0_0 = arith.constant 0 : index
    %0 = vector.load %arg1[%c0, %c0_0] : memref<32x128xf32, #tpu.memory_space<vmem>>, vector<32x128xf32>
    %cst = arith.constant dense<0.000000e+00> : vector<32xf32>
    %1 = vector.multi_reduction <add>, %0, %cst [1] : vector<32x128xf32> to vector<32xf32>
    %2 = vector.shape_cast %1 : vector<32xf32> to vector<32x1xf32>
    %cst_1 = arith.constant 1.280000e+02 : f32
    %3 = vector.broadcast %cst_1 : f32 to vector<32x1xf32>
    %4 = arith.divf %2, %3 : vector<32x1xf32>
    %5 = vector.broadcast %4 : vector<32x1xf32> to vector<32x128xf32>
    %6 = arith.subf %0, %5 : vector<32x128xf32>
    %7 = arith.mulf %6, %6 : vector<32x128xf32>
    %cst_2 = arith.constant dense<0.000000e+00> : vector<32xf32>
    %8 = vector.multi_reduction <add>, %7, %cst_2 [1] : vector<32x128xf32> to vector<32xf32>
    %9 = vector.shape_cast %8 : vector<32xf32> to vector<32x1xf32>
    %cst_3 = arith.constant 1.280000e+02 : f32
    %10 = vector.broadcast %cst_3 : f32 to vector<32x1xf32>
    %11 = arith.divf %9, %10 : vector<32x1xf32>
    %cst_4 = arith.constant 9.99999974E-6 : f32
    %12 = vector.broadcast %cst_4 : f32 to vector<32x1xf32>
    %13 = arith.addf %11, %12 : vector<32x1xf32>
    %14 = math.rsqrt %13 : vector<32x1xf32>
    %15 = vector.broadcast %14 : vector<32x1xf32> to vector<32x128xf32>
    %16 = arith.mulf %6, %15 : vector<32x128xf32>
    %c0_5 = arith.constant 0 : index
    %c0_6 = arith.constant 0 : index
    %17 = vector.load %arg4[%c0_5, %c0_6] : memref<1x128xf32, #tpu.memory_space<vmem>>, vector<1x128xf32>
    %18 = vector.broadcast %17 : vector<1x128xf32> to vector<32x128xf32>
    %19 = arith.mulf %16, %18 : vector<32x128xf32>
    %c0_7 = arith.constant 0 : index
    %c0_8 = arith.constant 0 : index
    %20 = vector.load %arg5[%c0_7, %c0_8] : memref<1x128xf32, #tpu.memory_space<vmem>>, vector<1x128xf32>
    %21 = vector.broadcast %20 : vector<1x128xf32> to vector<32x128xf32>
    %22 = arith.addf %19, %21 : vector<32x128xf32>
    %23 = arith.truncf %22 : vector<32x128xf32> to vector<32x128xbf16>
    %c0_9 = arith.constant 0 : index
    %c0_10 = arith.constant 0 : index
    %24 = vector.load %arg7[%c0_9, %c0_10] : memref<32x128xbf16, #tpu.memory_space<vmem>>, vector<32x128xbf16>
    tpu.vector_store %arg7[%c0_9, %c0_10], %23 {strides = array<i32>} : memref<32x128xbf16, #tpu.memory_space<vmem>>, vector<32x128xbf16>,
    %25 = arith.truncf %22 : vector<32x128xf32> to vector<32x128xbf16>
    %c0_11 = arith.constant 0 : index
    %c0_12 = arith.constant 0 : index
    %26 = vector.load %arg2[%c0_11, %c0_12] : memref<128x256xbf16, #tpu.memory_space<vmem>>, vector<128x256xbf16>
    %cst_13 = arith.constant dense<0.000000e+00> : vector<32x256xf32>
    %27 = tpu.matmul %25, %26, %cst_13 {dimension_numbers = #tpu.dot_dimension_numbers<[1], [0], [0], [1], [0, 0, 1, 1], [], []>} : vector<32x128xbf16>, vector<128x256xbf16>, vector<32x256xf32> -> vector<32x256xf32>
    %c0_14 = arith.constant 0 : index
    %c0_15 = arith.constant 0 : index
    %28 = vector.load %arg3[%c0_14, %c0_15] : memref<1x256xf32, #tpu.memory_space<vmem>>, vector<1x256xf32>
    %29 = vector.broadcast %28 : vector<1x256xf32> to vector<32x256xf32>
    %30 = arith.addf %27, %29 : vector<32x256xf32>
    %31 = arith.truncf %30 : vector<32x256xf32> to vector<32x256xbf16>
    %c0_16 = arith.constant 0 : index
    %c0_17 = arith.constant 0 : index
    %32 = vector.load %arg6[%c0_16, %c0_17] : memref<32x256xbf16, #tpu.memory_space<vmem>>, vector<32x256xbf16>
    tpu.vector_store %arg6[%c0_16, %c0_17], %31 {strides = array<i32>} : memref<32x256xbf16, #tpu.memory_space<vmem>>, vector<32x256xbf16>,
    return
  }
  func.func @transform_0(%arg0: i32) -> (i32, i32) {
    %c0_i32 = arith.constant 0 : i32
    %c0_i32_0 = arith.constant 0 : i32
    return %arg0, %c0_i32 : i32, i32
  }
  func.func @transform_1(%arg0: i32) -> (i32, i32) {
    %c0_i32 = arith.constant 0 : i32
    %c0_i32_0 = arith.constant 0 : i32
    %c0_i32_1 = arith.constant 0 : i32
    return %c0_i32, %c0_i32_0 : i32, i32
  }
  func.func @transform_2(%arg0: i32) -> (i32, i32) {
    %c0_i32 = arith.constant 0 : i32
    %c0_i32_0 = arith.constant 0 : i32
    %c0_i32_1 = arith.constant 0 : i32
    return %c0_i32, %c0_i32_0 : i32, i32
  }
  func.func @transform_3(%arg0: i32) -> (i32, i32) {
    %c0_i32 = arith.constant 0 : i32
    %c0_i32_0 = arith.constant 0 : i32
    %c0_i32_1 = arith.constant 0 : i32
    return %c0_i32, %c0_i32_0 : i32, i32
  }
  func.func @transform_4(%arg0: i32) -> (i32, i32) {
    %c0_i32 = arith.constant 0 : i32
    %c0_i32_0 = arith.constant 0 : i32
    %c0_i32_1 = arith.constant 0 : i32
    return %c0_i32, %c0_i32_0 : i32, i32
  }
  func.func @transform_5(%arg0: i32) -> (i32, i32) {
    %c0_i32 = arith.constant 0 : i32
    %c0_i32_0 = arith.constant 0 : i32
    return %arg0, %c0_i32 : i32, i32
  }
  func.func @transform_6(%arg0: i32) -> (i32, i32) {
    %c0_i32 = arith.constant 0 : i32
    %c0_i32_0 = arith.constant 0 : i32
    return %arg0, %c0_i32 : i32, i32
  }
}

</mosaic_0001>

<bundles_post_ra>
// kernel: tpu_custom_call.1
= control target key start
LH: loop header
LB: loop body
LE: loop exit
PB: predicated region body
PF: predicated region fallthrough
CT: control target
= control target key end

     0   :  { %12 = vsyncpa [#allocation3], 0  ;;  %s1399_s0 = inlined_call_operand.hbm [shape: f32[60,128], index: 0, kind: input, shape index: {}]   ;;  %s1400_s1 = inlined_call_operand.hbm [shape: bf16[128,256], index: 1, kind: input, shape index: {}]   ;;  %s1401_s2 = inlined_call_operand.vmem [shape: f32[1,256], index: 2, kind: input, shape index: {}]   ;;  %s1402_s3 = inlined_call_operand.vmem [shape: f32[1,128], index: 3, kind: input, shape index: {}]   ;;  %s1403_s4 = inlined_call_operand.vmem [shape: f32[1,128], index: 4, kind: input, shape index: {}]   ;;  %s1404_s5 = inlined_call_operand.hbm [shape: bf16[60,256], index: 5, kind: output, shape index: {0}]   ;;  %s1405_s6 = inlined_call_operand.hbm [shape: bf16[60,128], index: 6, kind: output, shape index: {1}]  }
   0x1   :  { %14 = vsyncpa [#allocation3 + $0x1], 0 }
   0x2   :  { %15 = vsyncpa [#allocation6], 0 }
   0x3   :  { %16 = vsyncpa [#allocation4], 0 }
   0x4   :  { %18 = vsyncpa [#allocation4 + $0x1], 0 }
   0x5   :  { %19 = vsyncpa [#allocation9], 0 }
   0x6   :  { %21 = vsyncpa [#allocation9 + $0x1], 0  ;;  %s1126_s21 = smov 0   ;;  %s1128_s22 = smov 0  }
   0x7   :  { %s1130_s23 = smov 0   ;;  %s1132_s24 = smov 0  }
   0x8 LB: > { %s1147_s25 = sadd.s32 4294967295, %s1078_s24   ;;  %s731_s26 = sadd.s32 4294967294, %s1078_s24   ;;  %s1078_s24 = sphi %s1132_s24, %s1425_s24   ;;  %s1074_s23 = sphi %s1130_s23, %s1424_s23   ;;  %s1070_s22 = sphi %s1128_s22, %s1423_s22   ;;  %s1066_s21 = sphi %s1126_s21, %s1422_s21  }
   0x9   : > { %p47_p0 = scmp.ne.s32.totalorder %s1070_s22, %s1066_s21  ;;  %p1406_p1 = scmp.eq.s32.totalorder %s1147_s25, 0 }
   0xa   : > { %p161_p3 = scmp.eq.s32.totalorder %s731_s26, 1  ;;  %p732_p5 = scmp.ge.s32.totalorder %s1078_s24, 1 }
   0xb   : > { %p1156_p4 = por %p1406_p1, %p47_p0  ;;  %p194_p7 = scmp.lt.s32.totalorder %s1078_s24, 3 }
   0xc   : > { %p1161_p6 = por %p161_p3, %p47_p0  ;;  %s1080_s30 = smov [#allocation5]  }
   0xd   : > { %s1409_s27 = scalar_select %p1156_p4, 1, 0 }
   0xe   : > { %s1410_s28 = scalar_select %p1161_p6, 1, 0 }
   0xf   : > { %p1166_p8 = pnand %p732_p5, %p194_p7  ;;  %s206_s7 = sshll.u32 %s1080_s30, 4  ;;  %s1170_s7 = int_to_ptr.vmem [resolvable:$true] %s206_s7 }
  0x10   : > { %s1182_s9 = sadd.s32 1, %s1078_s24   ;;  %s34_s10 = sadd.s32 1, %s1074_s23 }
  0x11   : > { %s1411_s29 = scalar_select %p1166_p8, 1, 0 }
  0x12   : > { %p827_p9 = pneg %p1166_p8  ;;  %s31_s11 = ssub.s32 %s1078_s24, %s1182_s9 }
  0x13   : > { %s918_s14 = scalar_lea.hbm %s1400_s1, 2048 }
  0x14   : > { %p1177_p11 = pnand %p827_p9, %p1406_p1  ;;  %p919_p12 = scmp.ne.s32.totalorder %s1400_s1, %s918_s14 }
  0x15   : > { %p925_p5 = scmp.lt.u32.totalorder %s918_s14, %s1400_s1 }
  0x16   : > { %p920_p13 = pneg %p1177_p11 }
  0x18   : > { %p921_p0 = pnand %p920_p13, %p919_p12 }
  0x1a   : > { %p922_p3 = pneg %p921_p0 }
  0x1c   : > { %p927_p7 = pnand %p925_p5, %p922_p3 }
  0x1e   : > { %930 = shalt.err (!%p927_p7)
}
  0x1f   : > { %s931_s19 = scalar_lea.vmem %s1170_s7, 2048  ;;  %p939_p2 = scmp.lt.s32.totalorder %s1170_s7, %s1170_s7 }
  0x20   : > { %p932_p9 = scmp.ne.s32.totalorder %s1170_s7, %s931_s19  ;;  %p940_p6 = scmp.lt.s32.totalorder %s931_s19, %s931_s19 }
  0x22   : > { %p934_p10 = pnand %p932_p9, %p920_p13  ;;  %p941_p4 = por %p940_p6, %p939_p2 }
  0x24   : > { %p935_p1 = pneg %p934_p10 }
  0x26   : > { %p942_p8 = pnand %p941_p4, %p935_p1 }
  0x28   : > { %945 = shalt.err (!%p942_p8)
}
  0x29   : > { %s1081_s20 = smov 128   ;;  %s1082_s26 = smov 8  }
  0x2a   : > { %830 = dma.hbm_to_vmem [thread:$0]  (!%p1177_p11), %s1400_s1, 2048, %s1170_s7, [#allocation6], %s1081_s20, %s1081_s20, %s1082_s26  }
  0x2b   : > { %p32_p1 = scmp.eq.s32.totalorder %s31_s11, 0  ;;  %p41_p2 = scmp.ne.s32.totalorder %s1074_s23, %s1070_s22 }
  0x2c   : > { %p42_p4 = scmp.eq.s32.totalorder %s1078_s24, 0  ;;  %p843_p6 = scmp.lt.s32.totalorder %s1078_s24, 2 }
  0x2d   : > { %s1216_s13 = scalar_select %p32_p1, %s1074_s23, %s34_s10  }
  0x2e   : > { %p43_p8 = por %p42_p4, %p41_p2  ;;  %p1413_p10 = scmp.eq.s32.totalorder %s1147_s25, 1 }
  0x2f   : > { %s229_s8 = sand.u32 1, %s1074_s23   ;;  %s778_s15 = sshll.u32 %s1078_s24, 9 }
  0x30   : > { %p1220_p12 = por %p1413_p10, %p41_p2  ;;  %s735_s16 = sshll.u32 %s229_s8, 5 }
  0x31   : > { %s1229_s19 = scalar_lea.hbm %s1399_s0, %s778_s15  ;;  %s233_s7 = scalar_lea.vmem [#allocation2], %s735_s16 }
  0x32   : > { %s240_s10 = sshll.u32 %s233_s7, 4  ;;  %p1231_p11 = pnand %p843_p6, %p43_p8  ;;  %s1235_s10 = int_to_ptr.vmem [resolvable:$true] %s240_s10 }
  0x33   : > { %s1237_s30 = scalar_lea.sflag [#allocation3], %s229_s8  ;;  %s946_s12 = scalar_lea.hbm %s1229_s19, 512 }
  0x34   : > { %p947_p13 = scmp.ne.s32.totalorder %s1229_s19, %s946_s12  ;;  %p948_p0 = pneg %p1231_p11 }
  0x35   : > { %s951_s17 = scalar_lea.hbm %s1399_s0, 1024  ;;  %p952_p7 = scmp.lt.u32.totalorder %s1229_s19, %s1399_s0 }
  0x36   : > { %p949_p3 = pnand %p948_p0, %p947_p13  ;;  %p953_p9 = scmp.lt.u32.totalorder %s951_s17, %s946_s12 }
  0x37   : > { %p955_p2 = scmp.lt.u32.totalorder %s946_s12, %s1229_s19 }
  0x38   : > { %p950_p5 = pneg %p949_p3  ;;  %p954_p1 = por %p953_p9, %p952_p7 }
  0x3a   : > { %p956_p4 = por %p955_p2, %p954_p1 }
  0x3c   : > { %p957_p6 = pnand %p956_p4, %p950_p5 }
  0x3e   : > { %960 = shalt.err (!%p957_p6)
}
  0x3f   : > { %s961_s8 = scalar_lea.vmem %s1235_s10, 512  ;;  %s1083_s15 = smov [#allocation2]  }
  0x40   : > { %p962_p8 = scmp.ne.s32.totalorder %s1235_s10, %s961_s8  ;;  %s966_s16 = sshll.u32 %s1083_s15, 4  ;;  %s967_s16 = int_to_ptr.vmem [resolvable:$false] %s966_s16 }
  0x41   : > { %s968_s18 = scalar_lea.vmem %s967_s16, 1024  ;;  %p969_p3 = scmp.lt.s32.totalorder %s1235_s10, %s967_s16 }
  0x42   : > { %p964_p10 = pnand %p962_p8, %p948_p0  ;;  %p970_p7 = scmp.lt.s32.totalorder %s968_s18, %s961_s8 }
  0x44   : > { %p965_p13 = pneg %p964_p10  ;;  %p971_p9 = por %p970_p7, %p969_p3 }
  0x46   : > { %p972_p1 = pnand %p971_p9, %p965_p13 }
  0x48   : > { %975 = shalt.err (!%p972_p1)
}
  0x49   : > { %834 = dma.hbm_to_vmem [thread:$0]  (!%p1231_p11), %s1229_s19, 512, %s1235_s10, %s1237_s30, %s1081_s20, %s1081_s20, %s1082_s26  }
  0x4a   : > { %p1416_p0 = scmp.ne.s32.totalorder %s1411_s29, 0 }
  0x4b   : > { %s1271_s12 = sand.u32 (!%p1416_p0), 1, %s1070_s22   ;;  %p1417_p5 = scmp.ne.s32.totalorder (!%p1416_p0), %s1409_s27, 0 }
  0x4c   : > { %252 = sbr.rel (%p1416_p0) target bundleno = 643 (0x283), region = 40  ;;  %s739_s17 = sshll.u32 (!%p1416_p0), %s1271_s12, 5 }
  0x4d   : > { %s255_s7 = scalar_lea.sflag (!%p1416_p0), [#allocation3], %s1271_s12  ;;  %s258_s11 = scalar_lea.vmem (!%p1416_p0), [#allocation2], %s739_s17 }
  0x53   : > { %1049 = dma.done.wait (%p1417_p5), %s255_s7, 512  }
  0x54   : > { %1051 = vsyncadd (%p1417_p5), %s255_s7, 4294966784  ;;  %p1418_p11 = scmp.eq.s32.totalorder %s1147_s25, 0 }
  0x56   : > { %1053 = dma.done.wait (%p1418_p11), [#allocation6], 2048   ;;  %p1419_p2 = pmov %p1418_p11 }
  0x57   : > { %v300_v0 = vld [vmem:[%s258_s11] sm:$0xff]  ;;  %v302_v1 = vld [vmem:[%s258_s11 + $0x10] sm:$0xff]  ;;  %v301_v2 = vld [vmem:[%s258_s11 + $0x8] sm:$0xff]  ;;  %v1084_v33 = vmov 0   ;;  %s742_s19 = sshll.u32 %s1271_s12, 4  ;;  %s789_s8 = sshll.u32 %s1147_s25, 8 }
  0x58   : > { %1055 = vsyncadd (%p1419_p2), [#allocation6], 4294965248  ;;  %304 = vadd.xlane.f32.xlu0 %v300_v0  ;;  %308 = vadd.xlane.f32.xlu1 %v302_v1  ;;  %v303_v3 = vld [vmem:[%s258_s11 + $0x18] sm:$0xff]  ;;  %v886_v4 = vld [vmem:[#allocation5 + $0x4] ss:$8 sps:$4 sm:$0xff]   ;;  %s295_s10 = scalar_lea.vmem [#allocation8], %s742_s19  ;;  %s1318_s18 = scalar_lea.hbm %s1405_s6, %s789_s8 }
  0x59   : > { %v888_v5 = vld [vmem:[#allocation5] ss:$8 sps:$4 sm:$0xff]   ;;  %v889_v6 = vld [vmem:[#allocation5 + $0x14] ss:$8 sps:$4 sm:$0xff]   ;;  %499 = vmatprep.subr.bf16.mxu0 %v886_v4  ;;  %801 = vmatprep.subr.bf16.mxu1 %v886_v4  ;;  %v891_v23 = vld [vmem:[#allocation5 + $0x10] ss:$8 sps:$4 sm:$0xff]  }
  0x5a   : > { %500 = vmatpush1.bf16.msra.mxu0 %v888_v5  ;;  %809 = vmatpush1.bf16.msra.mxu1 %v888_v5  ;;  %v892_v24 = vld [vmem:[#allocation5 + $0x24] ss:$8 sps:$4 sm:$0xff]   ;;  %v894_v25 = vld [vmem:[#allocation5 + $0x20] ss:$8 sps:$4 sm:$0xff]   ;;  %v895_v26 = vld [vmem:[#allocation5 + $0x34] ss:$8 sps:$4 sm:$0xff]  }
  0x5b   : > { %501 = vmatprep.subr.bf16.mxu0 %v889_v6  ;;  %802 = vmatprep.subr.bf16.mxu1 %v889_v6  ;;  %v897_v27 = vld [vmem:[#allocation5 + $0x30] ss:$8 sps:$4 sm:$0xff]   ;;  %v898_v28 = vld [vmem:[#allocation5 + $0x44] ss:$8 sps:$4 sm:$0xff]   ;;  %v900_v29 = vld [vmem:[#allocation5 + $0x40] ss:$8 sps:$4 sm:$0xff]  }
  0x5c   : > { %306 = vadd.xlane.f32.xlu0 %v301_v2  ;;  %310 = vadd.xlane.f32.xlu1 %v303_v3  ;;  %v901_v30 = vld [vmem:[#allocation5 + $0x54] ss:$8 sps:$4 sm:$0xff]   ;;  %v903_v31 = vld [vmem:[#allocation5 + $0x50] ss:$8 sps:$4 sm:$0xff]   ;;  %v904_v32 = vld [vmem:[#allocation5 + $0x64] ss:$8 sps:$4 sm:$0xff]  }
  0x5d   : > { %531 = vmatprep.mubr.bf16.mxu0 %v1084_v33  ;;  %541 = vmatprep.mubr.bf16.mxu1 %v1084_v33  ;;  %v906_v34 = vld [vmem:[#allocation5 + $0x60] ss:$8 sps:$4 sm:$0xff]   ;;  %v907_v35 = vld [vmem:[#allocation5 + $0x74] ss:$8 sps:$4 sm:$0xff]   ;;  %v909_v36 = vld [vmem:[#allocation5 + $0x70] ss:$8 sps:$4 sm:$0xff]  }
  0x5e   : > { %502 = vmatpush1.bf16.msra.mxu0 %v891_v23  ;;  %810 = vmatpush1.bf16.msra.mxu1 %v891_v23  ;;  %v743_v51 = vld [vmem:[%s1402_s3] ss:$0 sm:$0xff]  ;;  %s616_s30 = sshll.u32 %s295_s10, 4  ;;  %s586_s7 = scalar_lea.sflag [#allocation9], %s1271_s12  ;;  %s1312_s30 = int_to_ptr.vmem [resolvable:$true] %s616_s30 }
  0x5f   : > { %503 = vmatprep.subr.bf16.mxu0 %v892_v24  ;;  %803 = vmatprep.subr.bf16.mxu1 %v892_v24  ;;  %v744_v56 = vld [vmem:[%s1403_s4] ss:$0 sm:$0xff]  ;;  %s976_s11 = scalar_lea.vmem %s1312_s30, 256  ;;  %s1085_s27 = smov [#allocation8]  }
  0x60   : > { %p977_p4 = scmp.ne.s32.totalorder %s1312_s30, %s976_s11  ;;  %s980_s29 = sshll.u32 %s1085_s27, 4  ;;  %s981_s29 = int_to_ptr.vmem [resolvable:$false] %s980_s29 }
  0x61   : > { %s982_s20 = scalar_lea.vmem %s981_s29, 512  ;;  %p983_p10 = scmp.lt.s32.totalorder %s1312_s30, %s981_s29 }
  0x62   : > { %504 = vmatpush1.bf16.msra.mxu0 %v894_v25  ;;  %811 = vmatpush1.bf16.msra.mxu1 %v894_v25  ;;  %p978_p6 = pnand %p977_p4, %p1220_p12  ;;  %p984_p13 = scmp.lt.s32.totalorder %s982_s20, %s976_s11 }
  0x63   : > { %505 = vmatprep.subr.bf16.mxu0 %v895_v26  ;;  %804 = vmatprep.subr.bf16.mxu1 %v895_v26 }
  0x64   : > { %p979_p8 = pneg %p978_p6  ;;  %p985_p3 = por %p984_p13, %p983_p10 }
  0x66   : > { %506 = vmatpush1.bf16.msra.mxu0 %v897_v27  ;;  %812 = vmatpush1.bf16.msra.mxu1 %v897_v27  ;;  %p986_p7 = pnand %p985_p3, %p979_p8 }
  0x67   : > { %507 = vmatprep.subr.bf16.mxu0 %v898_v28  ;;  %805 = vmatprep.subr.bf16.mxu1 %v898_v28 }
  0x6a   : > { %508 = vmatpush1.bf16.msra.mxu0 %v900_v29  ;;  %813 = vmatpush1.bf16.msra.mxu1 %v900_v29 }
  0x6b   : > { %509 = vmatprep.subr.bf16.mxu0 %v901_v30  ;;  %806 = vmatprep.subr.bf16.mxu1 %v901_v30 }
  0x6e   : > { %510 = vmatpush1.bf16.msra.mxu0 %v903_v31  ;;  %814 = vmatpush1.bf16.msra.mxu1 %v903_v31 }
  0x6f   : > { %511 = vmatprep.subr.bf16.mxu0 %v904_v32  ;;  %807 = vmatprep.subr.bf16.mxu1 %v904_v32 }
  0x72   : > { %512 = vmatpush1.bf16.msra.mxu0 %v906_v34  ;;  %815 = vmatpush1.bf16.msra.mxu1 %v906_v34 }
  0x73   : > { %513 = vmatprep.subr.bf16.mxu0 %v907_v35  ;;  %808 = vmatprep.subr.bf16.mxu1 %v907_v35 }
  0x76   : > { %514 = vmatpush1.bf16.msra.mxu0 %v909_v36  ;;  %816 = vmatpush1.bf16.msra.mxu1 %v909_v36 }
  0xe5   : > { %v305_v7 = vpop.xlane.xlu0 %304  ;;  %v309_v8 = vpop.xlane.xlu1 %308 }
  0xe6   : > { %v313_v9 = vmul.f32 0.0078125, %v305_v7  ;;  %v315_v10 = vmul.f32 0.0078125, %v309_v8 }
  0xe8   : > { %v1285_v11 = vsub.f32 %v300_v0, %v313_v9  ;;  %v1287_v12 = vsub.f32 %v302_v1, %v315_v10 }
  0xe9   : > { %v307_v13 = vpop.xlane.xlu0 %306  ;;  %v311_v14 = vpop.xlane.xlu1 %310 }
  0xea   : > { %v314_v15 = vmul.f32 0.0078125, %v307_v13  ;;  %v321_v16 = vmul.f32 %v1285_v11, %v1285_v11  ;;  %v316_v17 = vmul.f32 0.0078125, %v311_v14  ;;  %v323_v20 = vmul.f32 %v1287_v12, %v1287_v12 }
  0xec   : > { %v1291_v18 = vsub.f32 %v301_v2, %v314_v15  ;;  %325 = vadd.xlane.f32.xlu0 %v321_v16  ;;  %v1293_v19 = vsub.f32 %v303_v3, %v316_v17 }
  0xee   : > { %v322_v21 = vmul.f32 %v1291_v18, %v1291_v18  ;;  %v324_v22 = vmul.f32 %v1293_v19, %v1293_v19 }
  0xf0   : > { %329 = vadd.xlane.f32.xlu0 %v323_v20  ;;  %327 = vadd.xlane.f32.xlu1 %v322_v21 }
  0xf4   : > { %331 = vadd.xlane.f32.xlu1 %v324_v22 }
 0x179   : > { %v326_v37 = vpop.xlane.xlu0 %325 }
 0x17a   : > { %v333_v38 = vmul.f32 0.0078125, %v326_v37 }
 0x17c   : > { %v337_v39 = vadd.f32 1e-05, %v333_v38 }
 0x17d   : > { %v328_v40 = vpop.xlane.xlu1 %327  ;;  %v330_v41 = vpop.xlane.xlu0 %329 }
 0x17e   : > { %910 = vrsqrt.f32 %v337_v39  ;;  %v334_v42 = vmul.f32 0.0078125, %v328_v40  ;;  %v335_v43 = vmul.f32 0.0078125, %v330_v41 }
 0x180   : > { %v338_v44 = vadd.f32 1e-05, %v334_v42  ;;  %v339_v45 = vadd.f32 1e-05, %v335_v43 }
 0x181   : > { %v332_v46 = vpop.xlane.xlu1 %331 }
 0x182   : > { %912 = vrsqrt.f32 %v338_v44  ;;  %v336_v47 = vmul.f32 0.0078125, %v332_v46 }
 0x183   : > { %914 = vrsqrt.f32 %v339_v45 }
 0x184   : > { %v340_v48 = vadd.f32 1e-05, %v336_v47 }
 0x186   : > { %916 = vrsqrt.f32 %v340_v48 }
 0x188   : > { %v911_v49 = vpop.eup %910 }
 0x189   : > { %v345_v50 = vmul.f32 %v911_v49, %v1285_v11 }
 0x18b   : > { %v356_v55 = vmul.f32 %v743_v51, %v345_v50 }
 0x18c   : > { %v913_v52 = vpop.eup %912 }
 0x18d   : > { %v915_v53 = vpop.eup %914  ;;  %v346_v54 = vmul.f32 %v913_v52, %v1291_v18  ;;  %v367_v60 = vadd.f32 %v744_v56, %v356_v55 }
 0x18e   : > { %v347_v57 = vmul.f32 %v915_v53, %v1287_v12 }
 0x18f   : > { %v357_v58 = vmul.f32 %v743_v51, %v346_v54 }
 0x190   : > { %v917_v59 = vpop.eup %916  ;;  %v358_v63 = vmul.f32 %v743_v51, %v347_v57 }
 0x191   : > { %v368_v61 = vadd.f32 %v744_v56, %v357_v58  ;;  %v348_v62 = vmul.f32 %v917_v59, %v1293_v19 }
 0x192   : > { %v369_v2 = vadd.f32 %v744_v56, %v358_v63 }
 0x193   : > { %v371_v0 = vpack.c.bf16 %v368_v61, %v367_v60  ;;  %v359_v1 = vmul.f32 %v743_v51, %v348_v62 }
 0x195   : > { %794 = vst [vmem:[%s295_s10] sm:$0xff] %v371_v0   ;;  %532 = vmatmul.mubr.bf16.vlgmr.msra.gmra.mrb[0].mxu0 %v371_v0  ;;  %v370_v3 = vadd.f32 %v744_v56, %v359_v1 }
 0x197   : > { %v372_v4 = vpack.c.bf16 %v370_v3, %v369_v2 }
 0x199   : > { %800 = vst [vmem:[%s295_s10 + $0x8] sm:$0xff] %v372_v4   ;;  %542 = vmatmul.mubr.bf16.vlgmr.msra.gmra.mrb[0].mxu1 %v372_v4 }
 0x19a   : > { %989 = shalt.err (!%p986_p7)
}
 0x19b   : > { %s990_s26 = scalar_lea.hbm %s1318_s18, 256  ;;  %s994_s8 = scalar_lea.hbm %s1405_s6, 512 }
 0x19c   : > { %p991_p9 = scmp.ne.s32.totalorder %s1318_s18, %s990_s26  ;;  %p995_p5 = scmp.lt.u32.totalorder %s1318_s18, %s1405_s6 }
 0x19d   : > { %p996_p11 = scmp.lt.u32.totalorder %s994_s8, %s990_s26  ;;  %p998_p4 = scmp.lt.u32.totalorder %s990_s26, %s1318_s18 }
 0x19e   : > { %p992_p1 = pnand %p991_p9, %p1220_p12 }
 0x19f   : > { %p997_p2 = por %p996_p11, %p995_p5 }
 0x1a0   : > { %p993_p0 = pneg %p992_p1 }
 0x1a1   : > { %p999_p6 = por %p998_p4, %p997_p2 }
 0x1a3   : > { %p1000_p8 = pnand %p999_p6, %p993_p0 }
 0x1a5   : > { %1003 = shalt.err (!%p1000_p8)
}
 0x1a6   : > { %s1086_s11 = smov 64   ;;  %s1087_s27 = smov 4   ;;  %v409_v5 = vlaneseq  ;;  %v407_v8 = vld [vmem:[%s1401_s2] sm:$0x3] }
 0x1a7   : > { %824 = dma.vmem_to_hbm [thread:$0]  (%p1220_p12), %s1312_s30, 256, %s1318_s18, %s586_s7, %s1086_s11, %s1086_s11, %s1087_s27  }
 0x1a8   : > { %v410_v6 = vshrl.u32 %v409_v5, 7  ;;  %s288_s30 = scalar_lea.vmem [#allocation7], %s739_s17  ;;  %s788_s7 = sshll.u32 %s1147_s25, 9 }
 0x1a9   : > { %s600_s18 = sshll.u32 %s288_s30, 4  ;;  %s1355_s19 = scalar_lea.hbm %s1404_s5, %s788_s7  ;;  %s1350_s18 = int_to_ptr.vmem [resolvable:$true] %s600_s18 }
 0x1aa   : > { %v411_v7 = vsub.s32 0, %v410_v6  ;;  %v415_v9 = vsub.s32 1, %v410_v6  ;;  %s581_s10 = scalar_lea.sflag [#allocation4], %s1271_s12  ;;  %s1004_s25 = scalar_lea.vmem %s1350_s18, 512 }
 0x1ab   : > { %p1005_p10 = scmp.ne.s32.totalorder %s1350_s18, %s1004_s25  ;;  %s1088_s8 = smov [#allocation7]  }
 0x1ac   : > { %v412_v10 = vrot.slane %v407_v8, %v411_v7  ;;  %v416_v11 = vrot.slane %v407_v8, %v415_v9  ;;  %s1008_s15 = sshll.u32 %s1088_s8, 4  ;;  %s1009_s15 = int_to_ptr.vmem [resolvable:$false] %s1008_s15 }
 0x1ad   : > { %p1006_p13 = pnand %p1005_p10, %p1220_p12  ;;  %s1010_s16 = scalar_lea.vmem %s1009_s15, 1024 }
 0x1ae   : > { %p1011_p7 = scmp.lt.s32.totalorder %s1350_s18, %s1009_s15  ;;  %p1012_p9 = scmp.lt.s32.totalorder %s1010_s16, %s1004_s25 }
 0x1af   : > { %p1007_p3 = pneg %p1006_p13 }
 0x1b0   : > { %p1013_p1 = por %p1012_p9, %p1011_p7 }
 0x1b2   : > { %p1014_p0 = pnand %p1013_p1, %p1007_p3 }
 0x268   : > { %v533_v12 = vpop.f32.mrb[0].mxu0 }
 0x269   : > { %v534_v13 = vadd.f32 %v533_v12, %v412_v10  ;;  %v535_v14 = vpop.f32.mrb[1].mxu0 }
 0x26a   : > { %v536_v15 = vadd.f32 %v535_v14, %v416_v11  ;;  %v537_v16 = vpop.f32.mrb[2].mxu0 }
 0x26b   : > { %v538_v17 = vadd.f32 %v537_v16, %v412_v10  ;;  %v539_v18 = vpop.f32.mrb[3].mxu0 }
 0x26c   : > { %v783_v19 = vpack.c.bf16 %v536_v15, %v534_v13  ;;  %v540_v20 = vadd.f32 %v539_v18, %v416_v11  ;;  %v543_v21 = vpop.f32.mrb[0].mxu1 }
 0x26d   : > { %v544_v22 = vadd.f32 %v543_v21, %v412_v10  ;;  %v545_v23 = vpop.f32.mrb[1].mxu1 }
 0x26e   : > { %576 = vst [vmem:[%s288_s30] sm:$0xff] %v783_v19  ;;  %v784_v24 = vpack.c.bf16 %v540_v20, %v538_v17  ;;  %v546_v25 = vadd.f32 %v545_v23, %v416_v11  ;;  %v547_v26 = vpop.f32.mrb[2].mxu1 }
 0x26f   : > { %v548_v27 = vadd.f32 %v547_v26, %v412_v10  ;;  %v549_v28 = vpop.f32.mrb[3].mxu1 }
 0x270   : > { %577 = vst [vmem:[%s288_s30 + $0x8] sm:$0xff] %v784_v24  ;;  %v785_v29 = vpack.c.bf16 %v546_v25, %v544_v22  ;;  %v550_v30 = vadd.f32 %v549_v28, %v416_v11 }
 0x272   : > { %578 = vst [vmem:[%s288_s30 + $0x10] sm:$0xff] %v785_v29  ;;  %v786_v31 = vpack.c.bf16 %v550_v30, %v548_v27 }
 0x274   : > { %579 = vst [vmem:[%s288_s30 + $0x18] sm:$0xff] %v786_v31 }
 0x275   : > { %1017 = shalt.err (!%p1014_p0)
}
 0x276   : > { %s1018_s11 = scalar_lea.hbm %s1355_s19, 512  ;;  %s1022_s20 = scalar_lea.hbm %s1404_s5, 1024 }
 0x277   : > { %p1019_p5 = scmp.ne.s32.totalorder %s1355_s19, %s1018_s11  ;;  %p1023_p4 = scmp.lt.u32.totalorder %s1355_s19, %s1404_s5 }
 0x278   : > { %p1024_p6 = scmp.lt.u32.totalorder %s1022_s20, %s1018_s11  ;;  %p1026_p10 = scmp.lt.u32.totalorder %s1018_s11, %s1355_s19 }
 0x279   : > { %p1020_p11 = pnand %p1019_p5, %p1220_p12 }
 0x27a   : > { %p1025_p8 = por %p1024_p6, %p1023_p4 }
 0x27b   : > { %p1021_p2 = pneg %p1020_p11 }
 0x27c   : > { %p1027_p13 = por %p1026_p10, %p1025_p8 }
 0x27e   : > { %p1028_p3 = pnand %p1027_p13, %p1021_p2 }
 0x280   : > { %1031 = shalt.err (!%p1028_p3)
}
 0x281   : > { %s1089_s17 = smov 128   ;;  %s1090_s26 = smov 8  }
 0x282   : > { %823 = dma.vmem_to_hbm [thread:$0]  (%p1220_p12), %s1350_s18, 512, %s1355_s19, %s581_s10, %s1089_s17, %s1089_s17, %s1090_s26  }
 0x283 PF: > { %s631_s25 = sand.u32 1, %s1066_s21   ;;  %p1420_p7 = scmp.ne.s32.totalorder %s1410_s28, 0 }
 0x284   : > { %p1421_p9 = scmp.ge.s32.totalorder %s1078_s24, 2  ;;  %s632_s8 = scalar_lea.sflag [#allocation4], %s631_s25 }
 0x286   : > { %p836_p1 = pnand %p1421_p9, %p1420_p7 }
 0x288   : > { %1057 = dma.done.wait (!%p836_p1), %s632_s8, 512  }
 0x289   : > { %1059 = vsyncadd (!%p836_p1), %s632_s8, 4294966784  ;;  %s641_s15 = scalar_lea.sflag [#allocation9], %s631_s25 }
 0x28a   : > { %1061 = dma.done.wait (!%p836_p1), %s641_s15, 256  }
 0x28b   : > { %1063 = vsyncadd (!%p836_p1), %s641_s15, 4294967040  ;;  %p24_p12 = scmp.ge.s32.totalorder %s1182_s9, 4   ;;  %s1422_s21 = smov %s1070_s22 }
 0x28c   : > { %s1423_s22 = smov %s1074_s23  ;;  %s1424_s23 = smov %s1216_s13 }
 0x28d   : > { %s1425_s24 = smov %s1182_s9  ;;  %26 = sbr.rel (!%p24_p12) target bundleno = 8 (0x8), region = 106 }
 0x294   :  { %646 = vsyncpa [#allocation3], 1 }
 0x295   :  { %648 = vsyncpa [#allocation3 + $0x1], 1 }
 0x296   :  { %649 = vsyncpa [#allocation6], 1 }
 0x297   :  { %650 = vsyncpa [#allocation4], 1 }
 0x298   :  { %652 = vsyncpa [#allocation4 + $0x1], 1 }
 0x299   :  { %653 = vsyncpa [#allocation9], 1 }
 0x29a   :  { %655 = vsyncpa [#allocation9 + $0x1], 1 }

</bundles_post_ra>
